<compile_context>
chip_gen: v5e
topology: v5e:2x2
jax: 0.10.0
libtpu: 0.0.40
codegen_flags: <defaults>
</compile_context>

<pallas_src>
import jax
import jax.numpy as jnp
from jax.experimental import pallas as pl
from jax.experimental.pallas import tpu as pltpu


def _cdiv(a, b):
    return -(-a // b)


def _tile(dim, target, align):
    """Pick a block size (multiple of `align`, ~<= target) and the padded extent."""
    nblk = _cdiv(dim, target)
    blk = align * _cdiv(dim, align * nblk)
    return blk, nblk, blk * nblk


def _concat_linear_kernel(x_ref, wt_ref, bias_ref, o_ref, acc_ref):
    # x_ref: (bm, bk)   wt_ref: (bk, bn)   bias_ref: (1, bn) f32
    # o_ref: (bm, bn)   acc_ref: (bm, bn) f32
    k = pl.program_id(3)

    @pl.when(k == 0)
    def _():
        acc_ref[...] = jnp.zeros_like(acc_ref)

    acc_ref[...] += jnp.dot(x_ref[...], wt_ref[...],
                            preferred_element_type=jnp.float32)

    @pl.when(k == pl.num_programs(3) - 1)
    def _():
        o_ref[...] = (acc_ref[...] + bias_ref[...]).astype(o_ref.dtype)


def concat_linear(t, x, params, *, bm=512, bn=2048, bk=512,
                  compute_dtype=jnp.bfloat16):
    """Pallas implementation of ConcatLinear.forward.

    t:      time, shape (batch, 1), (batch,), (1, 1) or scalar (broadcast over batch).
    x:      (batch, seq, dim_in).
    params: {'W': (dim_out, dim_in + 1), 'b': (dim_out,)} — nn.Linear params, with
            the time column last (matches torch.cat((x, t), dim=2)).
    """
    W, b = params["W"], params["b"]
    dim_out, dim_in_p1 = W.shape
    dim_in = dim_in_p1 - 1

    assert x.ndim == 3 and x.shape[-1] == dim_in, (x.shape, W.shape)
    B, S, K = x.shape
    N = dim_out
    out_dtype = x.dtype

    # --- fold t and the layer bias into per-batch (1, N) rows ------------------
    t_arr = jnp.asarray(t, jnp.float32)
    t2 = jnp.broadcast_to(t_arr.reshape(-1, 1), (B, 1))            # (B, 1)
    w_x = W[:, :dim_in]                                            # (N, K)
    w_t = W[:, dim_in:].astype(jnp.float32)                        # (N, 1)
    bias_rows = t2 @ w_t.T + b.astype(jnp.float32)[None, :]        # (B, N)

    # --- tiling / padding -------------------------------------------------------
    bm_e, nm, M_pad = _tile(S, bm, 8)        # rows (seq) per block
    bn_e, nn_, N_pad = _tile(N, bn, 128)     # lane-dense output columns
    bk_e, nk, K_pad = _tile(K, bk, 128)      # contraction depth

    x_p = jnp.pad(x, ((0, 0), (0, M_pad - S), (0, K_pad - K))).astype(compute_dtype)
    wt_p = jnp.pad(w_x.T, ((0, K_pad - K), (0, N_pad - N))).astype(compute_dtype)
    bias_p = jnp.pad(bias_rows, ((0, 0), (0, N_pad - N))).reshape(B, 1, N_pad)

    # --- explicit VMEM budget (double-buffered blocks + f32 accumulator) --------
    esz = jnp.dtype(compute_dtype).itemsize
    osz = jnp.dtype(out_dtype).itemsize
    vmem_est = (2 * bm_e * bk_e * esz          # x blocks
                + 2 * bk_e * bn_e * esz        # W^T blocks
                + 2 * bn_e * 4                 # fused bias rows
                + 2 * bm_e * bn_e * osz        # output blocks
                + bm_e * bn_e * 4)             # accumulator scratch
    vmem_limit = int(min(max(2 * vmem_est, 16 * 1024 * 1024), 48 * 1024 * 1024))

    grid = (B, nm, nn_, nk)

    out_p = pl.pallas_call(
        _concat_linear_kernel,
        out_shape=jax.ShapeDtypeStruct((B, M_pad, N_pad), out_dtype),
        grid_spec=pltpu.PrefetchScalarGridSpec(
            num_scalar_prefetch=0,
            grid=grid,
            in_specs=[
                # x tile of this batch element
                pl.BlockSpec((pl.Squeezed(), bm_e, bk_e),
                             lambda b_, i, j, k: (b_, i, k)),
                # W^T tile: constant block index when nn_ == nk == 1 -> resident,
                # fetched from HBM exactly once.
                pl.BlockSpec((bk_e, bn_e), lambda b_, i, j, k: (k, j)),
                # per-batch fused bias row
                pl.BlockSpec((pl.Squeezed(), 1, bn_e),
                             lambda b_, i, j, k: (b_, 0, j)),
            ],
            out_specs=pl.BlockSpec((pl.Squeezed(), bm_e, bn_e),
                                   lambda b_, i, j, k: (b_, i, j)),
            scratch_shapes=[pltpu.VMEM((bm_e, bn_e), jnp.float32)],
        ),
        compiler_params=pltpu.CompilerParams(
            dimension_semantics=("parallel", "parallel", "parallel", "arbitrary"),
            vmem_limit_bytes=vmem_limit),
    )(x_p, wt_p, bias_p)

    return out_p[:, :S, :N]


def _reference(t, x, W, b):
    B, S, _ = x.shape
    tt = jnp.broadcast_to(
        jnp.asarray(t, jnp.float32).reshape(-1, 1)[:, None, :], (B, S, 1))
    x_t = jnp.concatenate([x.astype(jnp.float32), tt], axis=2)
    return x_t @ W.T.astype(jnp.float32) + b.astype(jnp.float32)


if __name__ == "__main__":
    dim_in, dim_out = 32, 64
    batch, seq = 2, 8

    key = jax.random.PRNGKey(0)
    kw, kb, kx, kt = jax.random.split(key, 4)
    bound = 1.0 / (dim_in + 1) ** 0.5
    W = jax.random.uniform(kw, (dim_out, dim_in + 1), jnp.float32, -bound, bound)
    b = jax.random.uniform(kb, (dim_out,), jnp.float32, -bound, bound)
    params = {"W": W, "b": b}

    x = jax.random.normal(kx, (batch, seq, dim_in), jnp.float32)
    t = jax.random.uniform(kt, (batch, 1), jnp.float32)

    ref = _reference(t, x, W, b)

    # bf16 matmul operands (default; f32 accumulation on the MXU).
    out = jax.block_until_ready(concat_linear(t, x, params))
    assert out.shape == (batch, seq, dim_out)
    assert jnp.allclose(out, ref, atol=2e-2, rtol=2e-2), \
        f"bf16 mismatch: {jnp.max(jnp.abs(out - ref))}"

    # Full f32 path matches the reference tightly.
    out_f32 = jax.block_until_ready(
        concat_linear(t, x, params, compute_dtype=jnp.float32))
    assert jnp.allclose(out_f32, ref, atol=1e-5, rtol=1e-5), \
        f"f32 mismatch: {jnp.max(jnp.abs(out_f32 - ref))}"

    print("KERNEL_OK")
</pallas_src>

<mosaic_0001>
module attributes {stable_mosaic.version = 11 : i64} {
  func.func @_concat_linear_kernel(%arg0: i32, %arg1: i32, %arg2: i32, %arg3: i32, %arg4: memref<1x8x128xbf16, #tpu.memory_space<vmem>>, %arg5: memref<128x128xbf16, #tpu.memory_space<vmem>>, %arg6: memref<1x1x128xf32, #tpu.memory_space<vmem>>, %arg7: memref<1x8x128xf32, #tpu.memory_space<vmem>>, %arg8: memref<8x128xf32, #tpu.memory_space<vmem>>) attributes {dimension_semantics = [#tpu.dimension_semantics<parallel>, #tpu.dimension_semantics<parallel>, #tpu.dimension_semantics<parallel>, #tpu.dimension_semantics<arbitrary>], iteration_bounds = array<i64: 2, 1, 1, 1>, scalar_prefetch = 0 : i64, scratch_operands = 1 : i64, tpu.core_type = #tpu.core_type<tc>, window_params = [{transform_indices = @transform_0, window_bounds = array<i64: 1, 8, 128>}, {transform_indices = @transform_1, window_bounds = array<i64: 128, 128>}, {transform_indices = @transform_2, window_bounds = array<i64: 1, 1, 128>}, {transform_indices = @transform_3, window_bounds = array<i64: 1, 8, 128>}]} {
    %c0_i32 = arith.constant 0 : i32
    %0 = arith.cmpi eq, %arg3, %c0_i32 : i32
    %1 = arith.extui %0 : i1 to i32
    %c0_i32_0 = arith.constant 0 : i32
    %2 = arith.cmpi ne, %1, %c0_i32_0 : i32
    scf.if %2 {
      %cst_11 = arith.constant 0.000000e+00 : f32
      %13 = vector.broadcast %cst_11 : f32 to vector<8x128xf32>
      %c0_12 = arith.constant 0 : index
      %c0_13 = arith.constant 0 : index
      %14 = vector.load %arg8[%c0_12, %c0_13] : memref<8x128xf32, #tpu.memory_space<vmem>>, vector<8x128xf32>
      tpu.vector_store %arg8[%c0_12, %c0_13], %13 {strides = array<i32>} : memref<8x128xf32, #tpu.memory_space<vmem>>, vector<8x128xf32>,
    } else {
    }
    %c0 = arith.constant 0 : index
    %c0_1 = arith.constant 0 : index
    %3 = vector.load %arg8[%c0, %c0_1] : memref<8x128xf32, #tpu.memory_space<vmem>>, vector<8x128xf32>
    %c0_2 = arith.constant 0 : index
    %c0_3 = arith.constant 0 : index
    %c0_4 = arith.constant 0 : index
    %4 = vector.load %arg4[%c0_2, %c0_3, %c0_4] : memref<1x8x128xbf16, #tpu.memory_space<vmem>>, vector<1x8x128xbf16>
    %5 = vector.shape_cast %4 : vector<1x8x128xbf16> to vector<8x128xbf16>
    %c0_5 = arith.constant 0 : index
    %c0_6 = arith.constant 0 : index
    %6 = vector.load %arg5[%c0_5, %c0_6] : memref<128x128xbf16, #tpu.memory_space<vmem>>, vector<128x128xbf16>
    %cst = arith.constant dense<0.000000e+00> : vector<8x128xf32>
    %7 = tpu.matmul %5, %6, %cst {dimension_numbers = #tpu.dot_dimension_numbers<[1], [0], [0], [1], [0, 0, 1, 1], [], []>} : vector<8x128xbf16>, vector<128x128xbf16>, vector<8x128xf32> -> vector<8x128xf32>
    %8 = arith.addf %3, %7 : vector<8x128xf32>
    %c0_7 = arith.constant 0 : index
    %c0_8 = arith.constant 0 : index
    %9 = vector.load %arg8[%c0_7, %c0_8] : memref<8x128xf32, #tpu.memory_space<vmem>>, vector<8x128xf32>
    tpu.vector_store %arg8[%c0_7, %c0_8], %8 {strides = array<i32>} : memref<8x128xf32, #tpu.memory_space<vmem>>, vector<8x128xf32>,
    %c0_i32_9 = arith.constant 0 : i32
    %10 = arith.cmpi eq, %arg3, %c0_i32_9 : i32
    %11 = arith.extui %10 : i1 to i32
    %c0_i32_10 = arith.constant 0 : i32
    %12 = arith.cmpi ne, %11, %c0_i32_10 : i32
    scf.if %12 {
      %c0_11 = arith.constant 0 : index
      %c0_12 = arith.constant 0 : index
      %13 = vector.load %arg8[%c0_11, %c0_12] : memref<8x128xf32, #tpu.memory_space<vmem>>, vector<8x128xf32>
      %c0_13 = arith.constant 0 : index
      %c0_14 = arith.constant 0 : index
      %c0_15 = arith.constant 0 : index
      %14 = vector.load %arg6[%c0_13, %c0_14, %c0_15] : memref<1x1x128xf32, #tpu.memory_space<vmem>>, vector<1x1x128xf32>
      %15 = vector.shape_cast %14 : vector<1x1x128xf32> to vector<1x128xf32>
      %16 = vector.broadcast %15 : vector<1x128xf32> to vector<8x128xf32>
      %17 = arith.addf %13, %16 : vector<8x128xf32>
      %c0_16 = arith.constant 0 : index
      %c0_17 = arith.constant 0 : index
      %c0_18 = arith.constant 0 : index
      %18 = vector.load %arg7[%c0_16, %c0_17, %c0_18] : memref<1x8x128xf32, #tpu.memory_space<vmem>>, vector<1x8x128xf32>
      %19 = vector.shape_cast %18 : vector<1x8x128xf32> to vector<8x128xf32>
      %20 = vector.shape_cast %17 : vector<8x128xf32> to vector<1x8x128xf32>
      tpu.vector_store %arg7[%c0_16, %c0_17, %c0_18], %20 {strides = array<i32>} : memref<1x8x128xf32, #tpu.memory_space<vmem>>, vector<1x8x128xf32>,
    } else {
    }
    return
  }
  func.func @transform_0(%arg0: i32, %arg1: i32, %arg2: i32, %arg3: i32) -> (i32, i32, i32) {
    %c0_i32 = arith.constant 0 : i32
    return %arg0, %arg1, %arg3 : i32, i32, i32
  }
  func.func @transform_1(%arg0: i32, %arg1: i32, %arg2: i32, %arg3: i32) -> (i32, i32) {
    %c0_i32 = arith.constant 0 : i32
    return %arg3, %arg2 : i32, i32
  }
  func.func @transform_2(%arg0: i32, %arg1: i32, %arg2: i32, %arg3: i32) -> (i32, i32, i32) {
    %c0_i32 = arith.constant 0 : i32
    %c0_i32_0 = arith.constant 0 : i32
    return %arg0, %c0_i32, %arg2 : i32, i32, i32
  }
  func.func @transform_3(%arg0: i32, %arg1: i32, %arg2: i32, %arg3: i32) -> (i32, i32, i32) {
    %c0_i32 = arith.constant 0 : i32
    return %arg0, %arg1, %arg2 : i32, i32, i32
  }
}

</mosaic_0001>

<bundles_post_ra>
// kernel: tpu_custom_call.1
= control target key start
LH: loop header
LB: loop body
LE: loop exit
PB: predicated region body
PF: predicated region fallthrough
CT: control target
= control target key end

     0   :  { %8 = vsyncpa [#allocation4], 0  ;;  %s1030_s0 = inlined_call_operand.hbm [shape: bf16[2,8,128], index: 0, kind: input, shape index: {}]   ;;  %s1031_s1 = inlined_call_operand.hbm [shape: bf16[128,128], index: 1, kind: input, shape index: {}]   ;;  %s1032_s2 = inlined_call_operand.hbm [shape: f32[2,1,128], index: 2, kind: input, shape index: {}]   ;;  %s1033_s3 = inlined_call_operand.hbm [shape: f32[2,8,128], index: 3, kind: output, shape index: {}]  }
   0x1   :  { %10 = vsyncpa [#allocation4 + $0x1], 0 }
   0x2   :  { %11 = vsyncpa [#allocation7], 0 }
   0x3   :  { %12 = vsyncpa [#allocation5], 0 }
   0x4   :  { %14 = vsyncpa [#allocation5 + $0x1], 0  ;;  %s862_s12 = smov 0   ;;  %s864_s13 = smov 0  }
   0x5   :  { %s866_s14 = smov 0   ;;  %s868_s15 = smov 0  }
   0x6   :  { %s870_s16 = smov 0   ;;  %s872_s17 = smov 0  }
   0x7 LB: > { %s893_s18 = sadd.s32 4294967295, %s837_s17   ;;  %s522_s19 = sadd.s32 4294967294, %s837_s17   ;;  %s837_s17 = sphi %s872_s17, %s20_s17   ;;  %s833_s16 = sphi %s870_s16, %s1044_s16   ;;  %s829_s15 = sphi %s868_s15, %s1043_s15   ;;  %s825_s14 = sphi %s866_s14, %s1042_s14   ;;  %s821_s13 = sphi %s864_s13, %s1041_s13   ;;  %s817_s12 = sphi %s862_s12, %s1040_s12  }
   0x8   : > { %s46_s20 = sadd.s32 1, %s833_s16  ;;  %s57_s21 = sadd.s32 1, %s825_s14 }
   0x9   : > { %p48_p0 = scmp.ge.s32.totalorder %s46_s20, 2  ;;  %p64_p1 = scmp.ne.s32.totalorder %s825_s14, %s821_s13 }
   0xa   : > { %p65_p2 = scmp.eq.s32.totalorder %s837_s17, 0  ;;  %p70_p3 = scmp.ne.s32.totalorder %s821_s13, %s817_s12 }
   0xb   : > { %s1046_s20 = smov (%p48_p0, %s46_s20), 0  ;;  %p154_p5 = scmp.eq.s32.totalorder %s893_s18, 1 }
   0xc   : > { %p905_p4 = por %p65_p2, %p64_p1  ;;  %s50_s23 = ssub.s32 %s833_s16, %s1046_s20 }
   0xd   : > { %p160_p6 = scmp.eq.s32.totalorder %s522_s19, 1  ;;  %p55_p7 = scmp.eq.s32.totalorder %s50_s23, 0 }
   0xe   : > { %p912_p8 = por %p154_p5, %p64_p1  ;;  %p525_p10 = scmp.ge.s32.totalorder %s837_s17, 2 }
   0xf   : > { %p919_p9 = por %p160_p6, %p70_p3  ;;  %p602_p11 = scmp.lt.s32.totalorder %s837_s17, 2 }
  0x10   : > { %s924_s26 = scalar_select %p55_p7, %s825_s14, %s57_s21  }
  0x11   : > { %s198_s27 = sand.u32 1, %s837_s17   ;;  %s200_s28 = sand.u32 1, %s825_s14  }
  0x12   : > { %s526_s29 = sshll.u32 %s200_s28, 2  ;;  %s527_s30 = sshll.u32 %s833_s16, 2 }
  0x13   : > { %s208_s6 = scalar_lea.hbm %s1030_s0, %s527_s30  ;;  %s202_s7 = scalar_lea.vmem [#allocation3], %s526_s29 }
  0x14   : > { %s212_s8 = sshll.u32 %s202_s7, 4  ;;  %s210_s9 = sshll.u32 %s208_s6, 4  ;;  %s213_s8 = int_to_ptr.vmem [resolvable:$true] %s212_s8  ;;  %s211_s9 = int_to_ptr.hbm [resolvable:$true] %s210_s9 }
  0x15   : > { %p936_p12 = pnand %p602_p11, %p905_p4  ;;  %p71_p13 = scmp.eq.s32.totalorder %s893_s18, 0 }
  0x16   : > { %s199_s11 = scalar_lea.sflag [#allocation4], %s198_s27  ;;  %p523_p1 = scmp.ge.s32.totalorder %s837_s17, 1 }
  0x17   : > { %593 = dma.hbm_to_vmem [thread:$0]  (!%p936_p12), %s211_s9, 64, %s213_s8, %s199_s11  }
  0x18   : > { %p948_p0 = por %p71_p13, %p70_p3  ;;  %p167_p2 = scmp.lt.s32.totalorder %s837_s17, 3 }
  0x19   : > { %s182_s23 = sshll.u32 %s1031_s1, 4  ;;  %s839_s27 = smov [#allocation6]   ;;  %s183_s23 = int_to_ptr.hbm [resolvable:$true] %s182_s23 }
  0x1a   : > { %p957_p4 = pnand %p523_p1, %p167_p2  ;;  %s184_s30 = sshll.u32 %s839_s27, 4  ;;  %s185_s30 = int_to_ptr.vmem [resolvable:$true] %s184_s30 }
  0x1b   : > { %s226_s6 = scalar_lea.hbm %s1032_s2, %s833_s16  ;;  %s222_s8 = scalar_lea.vmem [#allocation8], %s200_s28 }
  0x1c   : > { %p586_p3 = pneg %p957_p4  ;;  %s228_s7 = sshll.u32 %s226_s6, 4  ;;  %s229_s7 = int_to_ptr.hbm [resolvable:$true] %s228_s7 }
  0x1d   : > { %s230_s9 = sshll.u32 %s222_s8, 4  ;;  %s840_s21 = smov 64   ;;  %s231_s9 = int_to_ptr.vmem [resolvable:$true] %s230_s9 }
  0x1e   : > { %p587_p5 = pnand %p586_p3, %p71_p13  ;;  %s841_s22 = smov 4  }
  0x1f   : > { %596 = dma.hbm_to_vmem [thread:$0]  (!%p936_p12), %s229_s7, 16, %s231_s9, %s199_s11  }
  0x20   : > { %589 = dma.hbm_to_vmem [thread:$0]  (!%p587_p5), %s183_s23, 1024, %s185_s30, [#allocation7], %s840_s21, %s840_s21, %s841_s22  }
  0x21   : > { %239 = sbr.rel (%p957_p4) target bundleno = 209 (0xd1), region = 32  ;;  %s241_s27 = sand.u32 (!%p957_p4), 1, %s893_s18  }
  0x22   : > { %s975_s4 = sand.u32 (!%p957_p4), 1, %s821_s13   ;;  %s242_s6 = scalar_lea.sflag (!%p957_p4), [#allocation4], %s241_s27 }
  0x23   : > { %s529_s5 = sshll.u32 (!%p957_p4), %s975_s4, 2 }
  0x24   : > { %s245_s28 = scalar_lea.vmem (!%p957_p4), [#allocation3], %s529_s5 }
  0x26   : > { %800 = dma.done.wait (%p948_p0), %s242_s6, 64  }
  0x27   : > { %802 = vsyncadd (%p948_p0), %s242_s6, 4294967232 }
  0x28   : > { %804 = dma.done.wait (%p71_p13), [#allocation7], 1024  }
  0x29   : > { %806 = vsyncadd (%p71_p13), [#allocation7], 4294966272  ;;  %s259_s10 = scalar_lea.vmem [#allocation8], %s975_s4 }
  0x2a   : > { %808 = dma.done.wait (%p948_p0), %s242_s6, 16  }
  0x2b   : > { %810 = vsyncadd (%p948_p0), %s242_s6, 4294967280  ;;  %v575_v0 = vld [vmem:[#allocation6 + $0x38] sm:$0xff]  ;;  %v574_v1 = vld [vmem:[#allocation6 + $0x30] sm:$0xff]  ;;  %s565_s18 = sshll.u32 %s829_s15, 3  ;;  %s531_s11 = sshll.u32 %s975_s4, 3 }
  0x2c   : > { %359 = vmatpush.bf16.msra.mxu0 %v575_v0  ;;  %v573_v2 = vld [vmem:[#allocation6 + $0x28] sm:$0xff]  ;;  %v572_v3 = vld [vmem:[#allocation6 + $0x20] sm:$0xff]  ;;  %v571_v4 = vld [vmem:[#allocation6 + $0x18] sm:$0xff]  ;;  %s397_s29 = scalar_lea.hbm %s1033_s3, %s565_s18  ;;  %s286_s30 = scalar_lea.vmem [#allocation9], %s531_s11 }
  0x2d   : > { %v570_v5 = vld [vmem:[#allocation6 + $0x10] sm:$0xff]  ;;  %v569_v6 = vld [vmem:[#allocation6 + $0x8] sm:$0xff]  ;;  %v568_v7 = vld [vmem:[#allocation6] sm:$0xff]  ;;  %s399_s7 = sshll.u32 %s286_s30, 4  ;;  %s401_s8 = sshll.u32 %s397_s29, 4  ;;  %s400_s7 = int_to_ptr.vmem [resolvable:$true] %s399_s7  ;;  %s402_s8 = int_to_ptr.hbm [resolvable:$true] %s401_s8 }
  0x2e   : > { %v294_v8 = vld [vmem:[%s245_s28] sm:$0xf]  ;;  %s385_s9 = scalar_lea.sflag [#allocation5], %s975_s4  ;;  %s761_s21 = sshra.s32 %s402_s8, 4  ;;  %s762_s21 = int_to_ptr.hbm [resolvable:$true] %s761_s21 }
  0x2f   : > { %v656_v9 = vld [vmem:[%s259_s10] ss:$0 sm:$0xff]  ;;  %s763_s22 = scalar_lea.hbm %s762_s21, 8  ;;  %s767_s5 = scalar_lea.hbm %s1033_s3, 16 }
  0x30   : > { %360 = vmatpush.bf16.msra.mxu0 %v574_v1  ;;  %p764_p6 = scmp.ne.s32.totalorder %s762_s21, %s763_s22  ;;  %p768_p12 = scmp.lt.s32.totalorder %s762_s21, %s1033_s3 }
  0x31   : > { %p769_p13 = scmp.lt.s32.totalorder %s767_s5, %s763_s22 }
  0x32   : > { %p765_p7 = pnand %p764_p6, %p912_p8 }
  0x33   : > { %p770_p0 = por %p769_p13, %p768_p12 }
  0x34   : > { %361 = vmatpush.bf16.msra.mxu0 %v573_v2  ;;  %p766_p11 = pneg %p765_p7 }
  0x36   : > { %p771_p1 = pnand %p770_p0, %p766_p11 }
  0x38   : > { %362 = vmatpush.bf16.msra.mxu0 %v572_v3 }
  0x3c   : > { %363 = vmatpush.bf16.msra.mxu0 %v571_v4 }
  0x40   : > { %364 = vmatpush.bf16.msra.mxu0 %v570_v5 }
  0x44   : > { %365 = vmatpush.bf16.msra.mxu0 %v569_v6 }
  0x48   : > { %366 = vmatpush.bf16.msra.mxu0 %v568_v7 }
  0x4b   : > { %367 = vmatmul.bf16.vlgmr.msra.gmra.mxu0 %v294_v8 }
  0xc8   : > { %v368_v10 = vpop.f32.mrf.mxu0 }
  0xc9   : > { %v382_v11 = vadd.f32 %v656_v9, %v368_v10 }
  0xcb   : > { %383 = vst [vmem:[%s286_s30] sm:$0xff] %v382_v11 }
  0xcc   : > { %774 = shalt.err (!%p771_p1)
}
  0xcd   : > { %584 = dma.vmem_to_hbm [thread:$0]  (%p912_p8), %s400_s7, 128, %s402_s8, %s385_s9  }
  0xd0   : > { %v370_v12 = vpop.f32.mrf.mxu0 }
  0xd1 PF: > { %s413_s4 = sand.u32 1, %s817_s12   ;;  %p598_p2 = pnand %p525_p10, %p919_p9 }
  0xd2   : > { %s414_s10 = scalar_lea.sflag [#allocation5], %s413_s4 }
  0xd3   : > { %p599_p4 = pneg %p598_p2 }
  0xd5   : > { %812 = dma.done.wait (%p599_p4), %s414_s10, 128  }
  0xd6   : > { %814 = vsyncadd (%p599_p4), %s414_s10, 4294967168  ;;  %s20_s17 = sadd.s32 1, %s837_s17   ;;  %s1040_s12 = smov %s821_s13 }
  0xd7   : > { %p17_p3 = scmp.ge.s32.totalorder %s20_s17, 4   ;;  %s1041_s13 = smov %s825_s14 }
  0xd8   : > { %s1042_s14 = smov %s924_s26  ;;  %s1043_s15 = smov %s833_s16 }
  0xd9   : > { %s1044_s16 = smov %s1046_s20  ;;  %19 = sbr.rel (!%p17_p3) target bundleno = 7 (0x7), region = 101 }
  0xde   :  { %420 = vsyncpa [#allocation4], 1 }
  0xdf   :  { %422 = vsyncpa [#allocation4 + $0x1], 1 }
  0xe0   :  { %423 = vsyncpa [#allocation7], 1 }
  0xe1   :  { %424 = vsyncpa [#allocation5], 1 }
  0xe2   :  { %426 = vsyncpa [#allocation5 + $0x1], 1 }

</bundles_post_ra>
